<compile_context>
chip_gen: v6e
topology: v6e:2x2x1
jax: 0.10.0
libtpu: 0.0.40
codegen_flags: <defaults>
</compile_context>

<pallas_src>
import dataclasses
import functools
from typing import Callable, List, Optional, Tuple

import jax
import jax.numpy as jnp
from jax.experimental import pallas as pl
from jax.experimental.pallas import tpu as pltpu


# ------------------------------ small helpers ------------------------------ #
def _round_up(x: int, m: int) -> int:
    return ((x + m - 1) // m) * m


def _largest_tile(padded: int, cap: int) -> int:
    """Largest multiple of 128 that divides `padded` and is <= cap."""
    best, d, limit = 128, 128, min(padded, cap)
    while d <= limit:
        if padded % d == 0:
            best = d
        d += 128
    return best


def _tile_vmem_bytes(tm: int, tn: int, tk: int) -> int:
    # double-buffered x (bf16) + W (bf16) + out/accumulator (f32) + bias (f32)
    return (2 * tm * tk * 2) + (2 * tk * tn * 2) + (2 * tm * tn * 4) + (2 * tn * 4)


def _vmem_capacity_bytes() -> int:
    try:
        info = pltpu.get_tpu_info()
        for attr in ("vmem_capacity_bytes", "vmem_bytes", "vmem_size_bytes"):
            v = getattr(info, attr, None)
            if isinstance(v, int) and v > 0:
                return v
    except Exception:
        pass
    return 64 * 1024 * 1024  # conservative: v7x per-TensorCore VMEM


def _select_tiles(max_tok: int, Kp: int, Np: int, vmem_budget: int):
    """Pick (tm, tn, tk) that divide (Mp, Np, Kp) and fit the VMEM budget."""
    if max_tok >= 128:
        tm = min(1024, _round_up(max_tok, 128))
    else:
        tm = max(16, _round_up(max_tok, 16))  # bf16 sublane pack => multiple of 16
    tn_cap, tk_cap = 2048, 1024
    while True:
        tn = _largest_tile(Np, tn_cap)
        tk = _largest_tile(Kp, tk_cap)
        fp = _tile_vmem_bytes(tm, tn, tk)
        if fp <= vmem_budget or (tn == 128 and tk == 128 and tm <= 16):
            return tm, tn, tk, fp
        if tn > 128:
            tn_cap = max(128, tn // 2)
        elif tk > 128:
            tk_cap = max(128, tk // 2)
        else:
            tm = max(16, _round_up(tm // 2, 16))


# ----------------------------- Pallas kernel ------------------------------- #
def _grouped_head_kernel(adapter_ids_ref, x_ref, w_ref, b_ref, o_ref):
    # grid = (m_blocks, n_blocks, k_blocks); k (reduction) is innermost.
    # adapter_ids_ref (SMEM scalar prefetch) is only consumed by the index_maps.
    del adapter_ids_ref
    k = pl.program_id(2)
    acc = jnp.dot(x_ref[...], w_ref[...], preferred_element_type=jnp.float32)

    @pl.when(k == 0)
    def _():
        # Output block is VMEM-resident across k -> it IS the f32 accumulator.
        # Fold the bias into the first partial product (no extra store+reload).
        o_ref[...] = acc + b_ref[...]

    @pl.when(k != 0)
    def _():
        o_ref[...] += acc


def grouped_lm_head(x, w_stack, b_stack, adapter_ids, *, tm, tn, tk,
                    vmem_limit_bytes):
    """Fused multi-adapter head: logits[m_blk] = x[m_blk] @ W[adapter(m_blk)] + b.

    x:        [Mp, Kp]    bf16  (per-adapter token slices, block-aligned, concatenated)
    w_stack:  [A, Kp, Np] bf16
    b_stack:  [A, 1, Np]  f32
    adapter_ids: [Mp//tm] int32 (adapter index per M block)
    returns:  [Mp, Np]    f32
    """
    Mp, Kp = x.shape
    A, Kp2, Np = w_stack.shape
    assert Kp == Kp2 and b_stack.shape == (A, 1, Np)
    assert Mp % tm == 0 and Np % tn == 0 and Kp % tk == 0
    grid = (Mp // tm, Np // tn, Kp // tk)

    n_m_blocks = Mp // tm
    flops = 2 * Mp * Np * Kp
    bytes_accessed = (Mp * Kp * 2 * (Np // tn)     # x re-streamed once per N block
                      + n_m_blocks * Kp * Np * 2   # W streamed once per M block (used adapters only)
                      + n_m_blocks * Np * 4        # bias per (m, j)
                      + Mp * Np * 4)               # f32 logits written once

    # TODO(synk): for decode-sized tiles on v5e, consider pipeline_mode=pl.Buffered(3)
    # on the W BlockSpec to hide the weight DMA latency.
    return pl.pallas_call(
        _grouped_head_kernel,
        out_shape=jax.ShapeDtypeStruct((Mp, Np), jnp.float32),
        grid_spec=pltpu.PrefetchScalarGridSpec(
            num_scalar_prefetch=1,
            grid=grid,
            in_specs=[
                # activations: row-block index is just the m grid index.
                pl.BlockSpec((tm, tk), lambda m, j, k, adp: (m, k)),
                # weights: adapter slab selected from the prefetched id array.
                pl.BlockSpec((None, tk, tn), lambda m, j, k, adp: (adp[m], k, j)),
                # bias: same adapter slab, lane-dense along vocab.
                pl.BlockSpec((None, 1, tn), lambda m, j, k, adp: (adp[m], 0, j)),
            ],
            out_specs=pl.BlockSpec((tm, tn), lambda m, j, k, adp: (m, j)),
        ),
        compiler_params=pltpu.CompilerParams(
            # Megacore split on the vocab (n) axis: on a 2-TC chip each core
            # gets disjoint weight columns (no duplicated weight HBM traffic).
            dimension_semantics=("arbitrary", "parallel", "arbitrary"),
            vmem_limit_bytes=vmem_limit_bytes,
        ),
        cost_estimate=pl.CostEstimate(
            flops=flops, transcendentals=0, bytes_accessed=bytes_accessed),
    )(adapter_ids, x, w_stack, b_stack)


# ------------------- packing plan + jitted pack-and-run -------------------- #
def _make_plan(spans: Tuple[Tuple[int, int, int], ...], tm: int):
    """spans: ((row_start, n_tokens, adapter_idx), ...) in config order.

    Returns (fast_path, padded_row_offsets, block_adapter_ids, Mp)."""
    offsets, block_ids = [], []
    off = 0
    contiguous = True
    prev_end = spans[0][0]
    for rs, nt, aid in spans:
        if rs != prev_end:
            contiguous = False
        prev_end = rs + nt
        offsets.append(off)
        rp = _round_up(nt, tm)
        block_ids.extend([aid] * (rp // tm))
        off += rp
    fast = contiguous and all(nt % tm == 0 for _, nt, _ in spans)
    return fast, tuple(offsets), tuple(block_ids), off


@functools.partial(jax.jit,
                   static_argnames=("spans", "tm", "tn", "tk", "vmem_limit_bytes"))
def _pack_and_run(data2d, w_stack, b_stack, *, spans, tm, tn, tk,
                  vmem_limit_bytes):
    hidden = data2d.shape[1]
    Kp = w_stack.shape[1]
    fast, offsets, block_ids, Mp = _make_plan(spans, tm)

    if fast:
        # Contiguous, tm-aligned slices: single cast (+ optional K pad), no concat.
        start0 = spans[0][0]
        total = sum(nt for _, nt, _ in spans)
        x = data2d[start0:start0 + total].astype(jnp.bfloat16)
        if Kp > hidden:
            x = jnp.pad(x, ((0, 0), (0, Kp - hidden)))
    else:
        parts = []
        for rs, nt, _ in spans:
            xi = data2d[rs:rs + nt].astype(jnp.bfloat16)
            rp = _round_up(nt, tm)
            xi = jnp.pad(xi, ((0, rp - nt), (0, Kp - hidden)))
            parts.append(xi)
        x = jnp.concatenate(parts, axis=0)

    adapter_ids = jnp.asarray(block_ids, dtype=jnp.int32)
    return grouped_lm_head(x, w_stack, b_stack, adapter_ids,
                           tm=tm, tn=tn, tk=tk,
                           vmem_limit_bytes=vmem_limit_bytes)


# ---------------------- plain-Python module plumbing ----------------------- #
@dataclasses.dataclass
class LoraBatchDataConfig:
    adapter_name_: str
    batch_start_idx_: int
    batch_end_idx_: int


@dataclasses.dataclass
class MultiLoraBatchData:
    lora_batch_data_config_: List[LoraBatchDataConfig]


@dataclasses.dataclass
class LLMModelOutput:
    adapter_name: str
    logits: jnp.ndarray
    loss_fn_: Optional[Callable] = None


class OutputHead:
    """One per-adapter output layer (lm_head / score Linear)."""

    def __init__(self, weight, bias):
        self.weight = weight  # [hidden, vocab]  (transposed vs torch Linear)
        self.bias = bias      # [1, vocab]
        self.loss = None      # TODO(synk): CE loss lives in the training loop.


class OutputLayer:
    def __init__(self):
        self.layers_ = {}
        # Memoized padded/bf16/stacked weights per (adapter set, Kp, Np).
        # TODO(synk): invalidate if a head's weights are mutated in place.
        self._packed_cache = {}

    def _get_packed(self, names, heads, hidden, vocab, Kp, Np):
        key = (names, Kp, Np)
        if key not in self._packed_cache:
            w_stack = jnp.stack([
                jnp.pad(h.weight.astype(jnp.bfloat16),
                        ((0, Kp - hidden), (0, Np - vocab)))
                for h in heads])
            b_stack = jnp.stack([
                jnp.pad(h.bias.astype(jnp.float32), ((0, 0), (0, Np - vocab)))
                for h in heads])
            self._packed_cache[key] = (w_stack, b_stack)
        return self._packed_cache[key]

    def forward(self, data, input_args: MultiLoraBatchData) -> List[LLMModelOutput]:
        configs = input_args.lora_batch_data_config_
        heads = []
        for cfg in configs:
            assert cfg.adapter_name_ != "" and cfg.adapter_name_ in self.layers_
            heads.append(self.layers_[cfg.adapter_name_])

        batch, seq, hidden = data.shape
        vocab = heads[0].weight.shape[1]
        # TODO(synk): fall back to per-adapter kernel calls if heads have
        # heterogeneous (hidden, vocab) shapes.
        assert all(h.weight.shape == (hidden, vocab) for h in heads)

        # Pad K / N only to 128 multiples; tiles are divisors of the padded sizes.
        Kp = _round_up(hidden, 128)
        Np = _round_up(vocab, 128)
        names = tuple(cfg.adapter_name_ for cfg in configs)
        w_stack, b_stack = self._get_packed(names, heads, hidden, vocab, Kp, Np)

        data2d = data.reshape(batch * seq, hidden)

        outputs: List[Optional[LLMModelOutput]] = [None] * len(configs)
        spans = []
        for i, cfg in enumerate(configs):
            nt = (cfg.batch_end_idx_ - cfg.batch_start_idx_) * seq
            if nt == 0:
                outputs[i] = LLMModelOutput(
                    adapter_name=cfg.adapter_name_,
                    logits=jnp.zeros((0, seq, vocab), jnp.float32),
                    loss_fn_=heads[i].loss)
            else:
                spans.append((cfg.batch_start_idx_ * seq, nt, i))
        if not spans:
            return outputs  # nothing to compute
        spans = tuple(spans)

        # ---- tile selection + per-generation VMEM budgeting ----
        max_tok = max(nt for _, nt, _ in spans)
        vmem_cap = _vmem_capacity_bytes()
        vmem_budget = int(vmem_cap * 0.55)
        tm, tn, tk, footprint = _select_tiles(max_tok, Kp, Np, vmem_budget)
        vmem_limit = min(int(vmem_cap * 3 // 4),
                         max(32 * 1024 * 1024, footprint + (8 << 20)))
        vmem_limit = max(vmem_limit, footprint + (2 << 20))

        logits_all = _pack_and_run(
            data2d, w_stack, b_stack,
            spans=spans, tm=tm, tn=tn, tk=tk, vmem_limit_bytes=vmem_limit)

        _, offsets, _, _ = _make_plan(spans, tm)
        for (rs, nt, ci), off_pad in zip(spans, offsets):
            cfg = configs[ci]
            bs_i = cfg.batch_end_idx_ - cfg.batch_start_idx_
            logits = logits_all[off_pad:off_pad + nt, :vocab].reshape(bs_i, seq, vocab)
            outputs[ci] = LLMModelOutput(
                adapter_name=cfg.adapter_name_,
                logits=logits,
                loss_fn_=heads[ci].loss)
        return outputs


# --------------------------------- main ------------------------------------ #
if __name__ == "__main__":
    batch, seq, hidden, vocab = 4, 8, 128, 256

    key = jax.random.PRNGKey(0)
    k_data, k_wa, k_ba, k_wb, k_bb = jax.random.split(key, 5)

    data = jax.random.normal(k_data, (batch, seq, hidden), dtype=jnp.float32)

    # Deterministic per-adapter parameters.
    w_a = jax.random.normal(k_wa, (hidden, vocab), dtype=jnp.float32) * 0.02
    b_a = jax.random.normal(k_ba, (1, vocab), dtype=jnp.float32) * 0.01
    w_b = jax.random.normal(k_wb, (hidden, vocab), dtype=jnp.float32) * 0.02
    b_b = jax.random.normal(k_bb, (1, vocab), dtype=jnp.float32) * 0.01

    model = OutputLayer()
    model.layers_["adapter_a"] = OutputHead(w_a, b_a)
    model.layers_["adapter_b"] = OutputHead(w_b, b_b)

    input_args = MultiLoraBatchData(
        lora_batch_data_config_=[
            LoraBatchDataConfig("adapter_a", 0, 2),
            LoraBatchDataConfig("adapter_b", 2, 4),
        ]
    )

    outputs = model.forward(data, input_args)
    for o in outputs:
        jax.block_until_ready(o.logits)

    # Second call exercises the cached-weights / jitted path.
    outputs = model.forward(data, input_args)
    for o in outputs:
        jax.block_until_ready(o.logits)

    # Correctness check against a plain-JAX reference using the same
    # bf16-inputs / f32-accumulate recipe as the kernel.
    def ref_head(x3d, w, b):
        flat = x3d.reshape(-1, hidden).astype(jnp.bfloat16)
        out = jnp.dot(flat, w.astype(jnp.bfloat16),
                      preferred_element_type=jnp.float32) + b
        return out.reshape(x3d.shape[0], seq, vocab)

    ref_a = ref_head(data[0:2], w_a, b_a)
    ref_b = ref_head(data[2:4], w_b, b_b)

    assert outputs[0].logits.shape == (2, seq, vocab)
    assert outputs[1].logits.shape == (2, seq, vocab)
    assert outputs[0].adapter_name == "adapter_a"
    assert outputs[1].adapter_name == "adapter_b"
    assert jnp.allclose(outputs[0].logits, ref_a, atol=1e-3, rtol=1e-3)
    assert jnp.allclose(outputs[1].logits, ref_b, atol=1e-3, rtol=1e-3)

    print("KERNEL_OK")
</pallas_src>

<mosaic_0001>
module attributes {stable_mosaic.version = 11 : i64} {
  func.func @_grouped_head_kernel(%arg0: i32, %arg1: i32, %arg2: i32, %arg3: memref<2xi32, #tpu.memory_space<smem>>, %arg4: memref<16x128xbf16, #tpu.memory_space<vmem>>, %arg5: memref<1x128x256xbf16, #tpu.memory_space<vmem>>, %arg6: memref<1x1x256xf32, #tpu.memory_space<vmem>>, %arg7: memref<16x256xf32, #tpu.memory_space<vmem>>) attributes {dimension_semantics = [#tpu.dimension_semantics<arbitrary>, #tpu.dimension_semantics<parallel>, #tpu.dimension_semantics<arbitrary>], iteration_bounds = array<i64: 2, 1, 1>, scalar_prefetch = 1 : i64, scratch_operands = 0 : i64, tpu.core_type = #tpu.core_type<tc>, window_params = [{transform_indices = @transform_0, window_bounds = array<i64: 16, 128>}, {transform_indices = @transform_1, window_bounds = array<i64: 1, 128, 256>}, {transform_indices = @transform_2, window_bounds = array<i64: 1, 1, 256>}, {transform_indices = @transform_3, window_bounds = array<i64: 16, 256>}]} {
    %c0 = arith.constant 0 : index
    %c0_0 = arith.constant 0 : index
    %0 = vector.load %arg4[%c0, %c0_0] : memref<16x128xbf16, #tpu.memory_space<vmem>>, vector<16x128xbf16>
    %c0_1 = arith.constant 0 : index
    %c0_2 = arith.constant 0 : index
    %c0_3 = arith.constant 0 : index
    %1 = vector.load %arg5[%c0_1, %c0_2, %c0_3] : memref<1x128x256xbf16, #tpu.memory_space<vmem>>, vector<1x128x256xbf16>
    %2 = vector.shape_cast %1 : vector<1x128x256xbf16> to vector<128x256xbf16>
    %cst = arith.constant dense<0.000000e+00> : vector<16x256xf32>
    %3 = tpu.matmul %0, %2, %cst {dimension_numbers = #tpu.dot_dimension_numbers<[1], [0], [0], [1], [0, 0, 1, 1], [], []>} : vector<16x128xbf16>, vector<128x256xbf16>, vector<16x256xf32> -> vector<16x256xf32>
    %c0_i32 = arith.constant 0 : i32
    %4 = arith.cmpi eq, %arg2, %c0_i32 : i32
    %5 = arith.extui %4 : i1 to i32
    %c0_i32_4 = arith.constant 0 : i32
    %6 = arith.cmpi ne, %5, %c0_i32_4 : i32
    scf.if %6 {
      %c0_7 = arith.constant 0 : index
      %c0_8 = arith.constant 0 : index
      %c0_9 = arith.constant 0 : index
      %10 = vector.load %arg6[%c0_7, %c0_8, %c0_9] : memref<1x1x256xf32, #tpu.memory_space<vmem>>, vector<1x1x256xf32>
      %11 = vector.shape_cast %10 : vector<1x1x256xf32> to vector<1x256xf32>
      %12 = vector.broadcast %11 : vector<1x256xf32> to vector<16x256xf32>
      %13 = arith.addf %3, %12 : vector<16x256xf32>
      %c0_10 = arith.constant 0 : index
      %c0_11 = arith.constant 0 : index
      %14 = vector.load %arg7[%c0_10, %c0_11] : memref<16x256xf32, #tpu.memory_space<vmem>>, vector<16x256xf32>
      tpu.vector_store %arg7[%c0_10, %c0_11], %13 {strides = array<i32>} : memref<16x256xf32, #tpu.memory_space<vmem>>, vector<16x256xf32>,
    } else {
    }
    %c0_i32_5 = arith.constant 0 : i32
    %7 = arith.cmpi ne, %arg2, %c0_i32_5 : i32
    %8 = arith.extui %7 : i1 to i32
    %c0_i32_6 = arith.constant 0 : i32
    %9 = arith.cmpi ne, %8, %c0_i32_6 : i32
    scf.if %9 {
      %c0_7 = arith.constant 0 : index
      %c0_8 = arith.constant 0 : index
      %10 = vector.load %arg7[%c0_7, %c0_8] : memref<16x256xf32, #tpu.memory_space<vmem>>, vector<16x256xf32>
      %11 = arith.addf %10, %3 : vector<16x256xf32>
      %c0_9 = arith.constant 0 : index
      %c0_10 = arith.constant 0 : index
      %12 = vector.load %arg7[%c0_9, %c0_10] : memref<16x256xf32, #tpu.memory_space<vmem>>, vector<16x256xf32>
      tpu.vector_store %arg7[%c0_9, %c0_10], %11 {strides = array<i32>} : memref<16x256xf32, #tpu.memory_space<vmem>>, vector<16x256xf32>,
    } else {
    }
    return
  }
  func.func @transform_0(%arg0: i32, %arg1: i32, %arg2: i32, %arg3: memref<2xi32, #tpu.memory_space<smem>>) -> (i32, i32) {
    %c0_i32 = arith.constant 0 : i32
    return %arg0, %arg2 : i32, i32
  }
  func.func @transform_1(%arg0: i32, %arg1: i32, %arg2: i32, %arg3: memref<2xi32, #tpu.memory_space<smem>>) -> (i32, i32, i32) {
    %0 = arith.index_cast %arg0 : i32 to index
    %1 = memref.load %arg3[%0] : memref<2xi32, #tpu.memory_space<smem>>
    %c0_i32 = arith.constant 0 : i32
    return %1, %arg2, %arg1 : i32, i32, i32
  }
  func.func @transform_2(%arg0: i32, %arg1: i32, %arg2: i32, %arg3: memref<2xi32, #tpu.memory_space<smem>>) -> (i32, i32, i32) {
    %0 = arith.index_cast %arg0 : i32 to index
    %1 = memref.load %arg3[%0] : memref<2xi32, #tpu.memory_space<smem>>
    %c0_i32 = arith.constant 0 : i32
    %c0_i32_0 = arith.constant 0 : i32
    return %1, %c0_i32, %arg1 : i32, i32, i32
  }
  func.func @transform_3(%arg0: i32, %arg1: i32, %arg2: i32, %arg3: memref<2xi32, #tpu.memory_space<smem>>) -> (i32, i32) {
    %c0_i32 = arith.constant 0 : i32
    return %arg0, %arg1 : i32, i32
  }
}

</mosaic_0001>

<bundles_post_ra>
// kernel: _pack_and_run.1
= control target key start
LH: loop header
LB: loop body
LE: loop exit
PB: predicated region body
PF: predicated region fallthrough
CT: control target
= control target key end

     0   :  { %s1207_s0 = inlined_call_operand.vmem [shape: s32[2], index: 0, kind: input, shape index: {}]   ;;  %s1208_s1 = inlined_call_operand.vmem [shape: bf16[32,128], index: 1, kind: input, shape index: {}]   ;;  %s1209_s2 = inlined_call_operand.hbm [shape: bf16[2,128,256], index: 2, kind: input, shape index: {}]   ;;  %s1210_s3 = inlined_call_operand.vmem [shape: f32[2,1,256], index: 3, kind: input, shape index: {}]   ;;  %s1211_s4 = inlined_call_operand.hbm [shape: f32[32,256], index: 4, kind: output, shape index: {}]  }
   0x1   :  { %s9_s17 = sshll.u32 %s1207_s0, 4  ;;  %s10_s17 = int_to_ptr.vmem [resolvable:$true] %s9_s17 }
   0x2   :  { %s794_s18 = scalar_lea.vmem %s10_s17, 16  ;;  %p799_p1 = scmp.lt.s32.totalorder %s10_s17, %s10_s17 }
   0x3   :  { %p795_p0 = scmp.ne.s32.totalorder %s10_s17, %s794_s18  ;;  %p800_p2 = scmp.lt.s32.totalorder %s794_s18, %s794_s18 }
   0x5   :  { %p801_p3 = por %p800_p2, %p799_p1 }
   0x7   :  { %p802_p4 = pnand %p801_p3, %p795_p0 }
   0x9   :  { %805 = shalt.err (!%p802_p4)  }
   0xa   :  { %s942_s19 = smov [#allocation3]  }
   0xb   :  { %12 = dma.vmem_to_smem %s10_s17, 16, %s942_s19, [#allocation2] }
   0xc   :  { %896 = dma.done.wait [#allocation2], 16 }
   0xd   :  { %897 = vsyncadd [#allocation2], 4294967280 }
   0xe   :  { %14 = sfence }
   0xf   :  { %15 = vsyncpa [#allocation5], 0 }
  0x10   :  { %17 = vsyncpa [#allocation5 + $0x1], 0 }
  0x11   :  { %18 = vsyncpa [#allocation6], 0 }
  0x12   :  { %20 = vsyncpa [#allocation6 + $0x1], 0  ;;  %s978_s20 = smov 0   ;;  %s980_s0 = smov 0  }
  0x13   :  { %s982_s21 = smov 0   ;;  %s984_s22 = smov 0  }
  0x14   :  { %s986_s23 = smov 0   ;;  %s988_s24 = smov 0  }
  0x15   :  { %s990_s25 = smov 0   ;;  %s992_s26 = smov 0  }
  0x16   :  { %s994_s27 = smov 0  }
  0x17 LB: > { %1216 = sst [smem:[#allocation13_spill]] %s936_s26  ;;  %s634_s28 = sadd.s32 4294967295, %s940_s27   ;;  %s940_s27 = sphi %s994_s27, %s26_s27   ;;  %s936_s26 = sphi %s992_s26, %s1230_s26   ;;  %s932_s25 = sphi %s990_s25, %s1229_s25   ;;  %s928_s24 = sphi %s988_s24, %s1236_s24   ;;  %s924_s23 = sphi %s986_s23, %s1235_s23   ;;  %s920_s22 = sphi %s984_s22, %s1234_s22   ;;  %s916_s21 = sphi %s982_s21, %s1233_s21   ;;  %s912_s0 = sphi %s980_s0, %s1232_s0   ;;  %s908_s20 = sphi %s978_s20, %s1231_s20  }
  0x18   : > { %s635_s29 = sadd.s32 4294967294, %s940_s27   ;;  %s45_s30 = sadd.s32 1, %s936_s26 }
  0x19   : > { %s77_s5 = sld [smem:[#allocation3 + %s936_s26]]  ;;  %p47_p5 = scmp.ge.s32.totalorder %s45_s30, 2 }
  0x1a   : > { %s86_s6 = sadd.s32 1, %s928_s24  ;;  %p93_p6 = scmp.ne.s32.totalorder %s928_s24, %s924_s23 }
  0x1b   : > { %p94_p7 = scmp.eq.s32.totalorder %s940_s27, 0  ;;  %s1238_s30 = smov (%p47_p5, %s45_s30), 0 }
  0x1c   : > { %1217 = sst [smem:[#allocation14_spill]] %s1238_s30  ;;  %p99_p9 = scmp.ne.s32.totalorder %s924_s23, %s920_s22 }
  0x1d   : > { %p1031_p8 = por %p94_p7, %p93_p6  ;;  %s78_s8 = sld [smem:[#allocation3 + %s1238_s30]] }
  0x1e   : > { %p100_p10 = scmp.eq.s32.totalorder %s634_s28, 0  ;;  %s139_s9 = ssub.s32 %s936_s26, %s1238_s30 }
  0x1f   : > { %s144_s10 = sadd.s32 1, %s916_s21  ;;  %p142_p12 = scmp.eq.s32.totalorder %s139_s9, 0 }
  0x20   : > { %p1040_p11 = por %p100_p10, %p99_p9  ;;  %p154_p13 = scmp.ne.s32.totalorder %s916_s21, %s912_s0 }
  0x21   : > { %p155_p0 = scmp.eq.s32.totalorder %s634_s28, 1  ;;  %p160_p2 = scmp.ne.s32.totalorder %s912_s0, %s908_s20 }
  0x22   : > { %s1219_s11 = scalar_select %p1040_p11, 1, 0 }
  0x23   : > { %s1047_s12 = scalar_select %p142_p12, %s916_s21, %s144_s10  }
  0x24   : > { %p1049_p1 = por %p155_p0, %p154_p13  ;;  %s79_s14 = ssub.s32 %s77_s5, %s78_s8 }
  0x25   : > { %p161_p3 = scmp.eq.s32.totalorder %s635_s29, 1  ;;  %p84_p4 = scmp.eq.s32.totalorder %s79_s14, 0 }
  0x26   : > { %s1220_s13 = scalar_select %p1049_p1, 1, 0 }
  0x27   : > { %p1056_p6 = por %p161_p3, %p160_p2  ;;  %p689_p7 = scmp.lt.s32.totalorder %s940_s27, 2 }
  0x28   : > { %s1062_s16 = scalar_select %p84_p4, %s928_s24, %s86_s6  }
  0x29   : > { %s1221_s15 = scalar_select %p1056_p6, 1, 0 }
  0x2a   : > { %s193_s17 = sand.u32 1, %s928_s24   ;;  %p1067_p9 = pnand %p689_p7, %p1031_p8 }
  0x2b   : > { %s638_s19 = sshll.u32 %s193_s17, 7  ;;  %p641_p10 = scmp.ge.s32.totalorder %s940_s27, 1 }
  0x2c   : > { %s673_s22 = scalar_select %p1031_p8, [#allocation3], [#allocation8] }
  0x2d   : > { %s674_s28 = scalar_select %p1031_p8, %s936_s26, 0 }
  0x2e   : > { %s1240_s22 = smov (!%p689_p7, %s673_s22), [#allocation9]  ;;  %s197_s5 = scalar_lea.vmem [#allocation4], %s638_s19 }
  0x2f   : > { %s1242_s28 = smov (!%p689_p7, %s674_s28), 0  ;;  %s210_s8 = sshll.u32 %s197_s5, 4  ;;  %s1082_s8 = int_to_ptr.vmem [resolvable:$true] %s210_s8 }
  0x30   : > { %s198_s29 = sld [smem:[%s1240_s22 + %s1242_s28]]  ;;  %p232_p12 = scmp.lt.s32.totalorder %s940_s27, 3 }
  0x31   : > { %s1089_s22 = scalar_lea.sflag [#allocation5], %s193_s17  ;;  %p808_p0 = pneg %p1067_p9 }
  0x32   : > { %p1078_p13 = pnand %p641_p10, %p232_p12 }
  0x34   : > { %s1223_s6 = scalar_select %p1078_p13, 1, 0 }
  0x36   : > { %s670_s9 = sshll.u32 %s198_s29, 11  ;;  %s811_s29 = scalar_lea.hbm %s1209_s2, 4096 }
  0x37   : > { %s1087_s7 = scalar_lea.hbm %s1209_s2, %s670_s9 }
  0x38   : > { %s806_s19 = scalar_lea.hbm %s1087_s7, 2048  ;;  %p812_p4 = scmp.lt.s32.totalorder %s1087_s7, %s1209_s2 }
  0x39   : > { %p807_p8 = scmp.ne.s32.totalorder %s1087_s7, %s806_s19  ;;  %p813_p7 = scmp.lt.s32.totalorder %s811_s29, %s806_s19 }
  0x3b   : > { %p809_p2 = pnand %p808_p0, %p807_p8  ;;  %p814_p10 = por %p813_p7, %p812_p4 }
  0x3d   : > { %p810_p3 = pneg %p809_p2 }
  0x3f   : > { %p815_p12 = pnand %p814_p10, %p810_p3 }
  0x41   : > { %818 = shalt.err (!%p815_p12)
}
  0x42   : > { %s819_s17 = scalar_lea.vmem %s1082_s8, 2048  ;;  %s943_s9 = smov [#allocation4]  }
  0x43   : > { %p820_p5 = scmp.ne.s32.totalorder %s1082_s8, %s819_s17  ;;  %s824_s10 = sshll.u32 %s943_s9, 4  ;;  %s825_s10 = int_to_ptr.vmem [resolvable:$false] %s824_s10 }
  0x44   : > { %s826_s14 = scalar_lea.vmem %s825_s10, 4096  ;;  %p827_p2 = scmp.lt.s32.totalorder %s1082_s8, %s825_s10 }
  0x45   : > { %p822_p6 = pnand %p820_p5, %p808_p0  ;;  %p828_p1 = scmp.lt.s32.totalorder %s826_s14, %s819_s17 }
  0x47   : > { %p823_p8 = pneg %p822_p6  ;;  %p829_p11 = por %p828_p1, %p827_p2 }
  0x49   : > { %p830_p13 = pnand %p829_p11, %p823_p8 }
  0x4b   : > { %833 = shalt.err (!%p830_p13)
}
  0x4c   : > { %s944_s26 = smov 128   ;;  %s945_s30 = smov 8  }
  0x4d   : > { %684 = dma.hbm_to_vmem [thread:$0]  (!%p1067_p9), %s1087_s7, 2048, %s1082_s8, %s1089_s22, %s944_s26, %s944_s26, %s945_s30  }
  0x4e   : > { %p1224_p5 = scmp.ne.s32.totalorder %s1223_s6, 0 }
  0x4f   : > { %s238_s19 = sand.u32 (!%p1224_p5), 1, %s924_s23   ;;  %p1225_p11 = scmp.ne.s32.totalorder (!%p1224_p5), %s1219_s11, 0 }
  0x50   : > { %236 = sbr.rel (%p1224_p5) target bundleno = 334 (0x14e), region = 32  ;;  %s642_s28 = sshll.u32 (!%p1224_p5), %s238_s19, 7 }
  0x51   : > { %s239_s5 = scalar_lea.sflag (!%p1224_p5), [#allocation5], %s238_s19  ;;  %s1113_s29 = scalar_lea.vmem (!%p1224_p5), [#allocation4], %s642_s28 }
  0x55   : > { %899 = dma.done.wait (%p1225_p11), %s239_s5, 2048  }
  0x56   : > { %901 = vsyncadd (%p1225_p11), %s239_s5, 4294965248  ;;  %v946_v0 = vmov 0   ;;  %s644_s18 = sshll.u32 %s932_s25, 1  ;;  %v769_v1 = vld [vmem:[%s1113_s29 + $0x74] ss:$8 sps:$4 sm:$0xff]   ;;  %s294_s22 = sld [smem:[#allocation3 + %s932_s25]]  ;;  %v461_v18 = vlaneseq }
  0x57   : > { %444 = vmatprep.mubr.bf16.mxu0 %v946_v0  ;;  %p283_p1 = scmp.lt.s32.totalorder %s644_s18, 3  ;;  %v771_v2 = vld [vmem:[%s1113_s29 + $0x70] ss:$8 sps:$4 sm:$0xff]   ;;  %412 = vmatprep.subr.bf16.mxu0 %v769_v1  ;;  %v772_v3 = vld [vmem:[%s1113_s29 + $0x64] ss:$8 sps:$4 sm:$0xff]   ;;  %s279_s26 = sand.u32 1, %s912_s0  }
  0x58   : > { %413 = vmatpush1.bf16.msra.mxu0 %v771_v2  ;;  %v774_v4 = vld [vmem:[%s1113_s29 + $0x60] ss:$8 sps:$4 sm:$0xff]   ;;  %v775_v5 = vld [vmem:[%s1113_s29 + $0x54] ss:$8 sps:$4 sm:$0xff]   ;;  %v777_v6 = vld [vmem:[%s1113_s29 + $0x50] ss:$8 sps:$4 sm:$0xff]  }
  0x59   : > { %s1244_s18 = smov (!%p283_p1, %s644_s18), 3  ;;  %414 = vmatprep.subr.bf16.mxu0 %v772_v3  ;;  %v778_v7 = vld [vmem:[%s1113_s29 + $0x44] ss:$8 sps:$4 sm:$0xff]   ;;  %v780_v8 = vld [vmem:[%s1113_s29 + $0x40] ss:$8 sps:$4 sm:$0xff]   ;;  %v462_v19 = vshrl.u32 %v461_v18, 7 }
  0x5a   : > { %s645_s11 = sshll.u32 %s1244_s18, 2  ;;  %v781_v9 = vld [vmem:[%s1113_s29 + $0x34] ss:$8 sps:$4 sm:$0xff]   ;;  %v783_v10 = vld [vmem:[%s1113_s29 + $0x30] ss:$8 sps:$4 sm:$0xff]   ;;  %s643_s30 = sshll.u32 %s279_s26, 5 }
  0x5b   : > { %s289_s7 = scalar_lea.vmem %s1208_s1, %s645_s11  ;;  %v784_v11 = vld [vmem:[%s1113_s29 + $0x24] ss:$8 sps:$4 sm:$0xff]   ;;  %v786_v12 = vld [vmem:[%s1113_s29 + $0x20] ss:$8 sps:$4 sm:$0xff]   ;;  %v787_v13 = vld [vmem:[%s1113_s29 + $0x14] ss:$8 sps:$4 sm:$0xff]  }
  0x5c   : > { %415 = vmatpush1.bf16.msra.mxu0 %v774_v4  ;;  %v789_v14 = vld [vmem:[%s1113_s29 + $0x10] ss:$8 sps:$4 sm:$0xff]   ;;  %v790_v15 = vld [vmem:[%s1113_s29 + $0x4] ss:$8 sps:$4 sm:$0xff]   ;;  %v792_v16 = vld [vmem:[%s1113_s29] ss:$8 sps:$4 sm:$0xff]  }
  0x5d   : > { %416 = vmatprep.subr.bf16.mxu0 %v775_v5  ;;  %v793_v17 = vld [vmem:[%s289_s7] sm:$0xff]   ;;  %p296_p6 = scmp.lt.s32.totalorder %s294_s22, 1  ;;  %v463_v20 = vsub.s32 0, %v462_v19  ;;  %v467_v22 = vsub.s32 1, %v462_v19  ;;  %s281_s19 = scalar_lea.vmem [#allocation7], %s643_s30 }
  0x5e   : > { %s512_s28 = sshll.u32 %s281_s19, 4  ;;  %s672_s5 = sshll.u32 %s932_s25, 9  ;;  %s1145_s28 = int_to_ptr.vmem [resolvable:$true] %s512_s28 }
  0x5f   : > { %s1246_s22 = smov (!%p296_p6, %s294_s22), 1  ;;  %s1150_s11 = scalar_lea.hbm %s1211_s4, %s672_s5 }
  0x60   : > { %417 = vmatpush1.bf16.msra.mxu0 %v777_v6  ;;  %s646_s17 = sshll.u32 %s1246_s22, 1  ;;  %s1152_s8 = scalar_lea.sflag [#allocation6], %s279_s26 }
  0x61   : > { %418 = vmatprep.subr.bf16.mxu0 %v778_v7  ;;  %s302_s14 = scalar_lea.vmem %s1210_s3, %s646_s17  ;;  %s834_s25 = scalar_lea.vmem %s1145_s28, 512 }
  0x62   : > { %v459_v21 = vld [vmem:[%s302_s14] sm:$0x3]  ;;  %p835_p9 = scmp.ne.s32.totalorder %s1145_s28, %s834_s25  ;;  %p1226_p13 = scmp.ne.s32.totalorder %s1220_s13, 0 }
  0x63   : > { %v464_v23 = vrot.slane %v459_v21, %v463_v20  ;;  %v468_v24 = vrot.slane %v459_v21, %v467_v22  ;;  %s947_s6 = smov [#allocation7]  }
  0x64   : > { %419 = vmatpush1.bf16.msra.mxu0 %v780_v8  ;;  %p836_p0 = pnand %p835_p9, %p1226_p13  ;;  %s838_s7 = sshll.u32 %s947_s6, 4  ;;  %s839_s7 = int_to_ptr.vmem [resolvable:$false] %s838_s7 }
  0x65   : > { %420 = vmatprep.subr.bf16.mxu0 %v781_v9  ;;  %s840_s22 = scalar_lea.vmem %s839_s7, 1024  ;;  %p841_p4 = scmp.lt.s32.totalorder %s1145_s28, %s839_s7 }
  0x66   : > { %p837_p3 = pneg %p836_p0  ;;  %p842_p7 = scmp.lt.s32.totalorder %s840_s22, %s834_s25 }
  0x68   : > { %421 = vmatpush1.bf16.msra.mxu0 %v783_v10  ;;  %p843_p10 = por %p842_p7, %p841_p4 }
  0x69   : > { %422 = vmatprep.subr.bf16.mxu0 %v784_v11 }
  0x6a   : > { %p844_p12 = pnand %p843_p10, %p837_p3 }
  0x6c   : > { %423 = vmatpush1.bf16.msra.mxu0 %v786_v12 }
  0x6d   : > { %424 = vmatprep.subr.bf16.mxu0 %v787_v13 }
  0x70   : > { %425 = vmatpush1.bf16.msra.mxu0 %v789_v14 }
  0x71   : > { %426 = vmatprep.subr.bf16.mxu0 %v790_v15 }
  0x74   : > { %427 = vmatpush1.bf16.msra.mxu0 %v792_v16 }
  0x77   : > { %445 = vmatmul.mubr.bf16.vlgmr.msra.gmra.mxu0 %v793_v17 }
 0x137   : > { %v446_v25 = vpop.f32.mrf.mxu0 }
 0x138   : > { %v471_v26 = vadd.f32 %v464_v23, %v446_v25 }
 0x139   : > { %v448_v27 = vpop.f32.mrf.mxu0 }
 0x13a   : > { %475 = vst [vmem:[%s281_s19] sm:$0xff] %v471_v26  ;;  %v472_v28 = vadd.f32 %v468_v24, %v448_v27 }
 0x13b   : > { %v450_v29 = vpop.f32.mrf.mxu0 }
 0x13c   : > { %476 = vst [vmem:[%s281_s19 + $0x8] sm:$0xff] %v472_v28  ;;  %v473_v30 = vadd.f32 %v464_v23, %v450_v29 }
 0x13d   : > { %v452_v31 = vpop.f32.mrf.mxu0 }
 0x13e   : > { %477 = vst [vmem:[%s281_s19 + $0x10] sm:$0xff] %v473_v30  ;;  %v474_v32 = vadd.f32 %v468_v24, %v452_v31 }
 0x140   : > { %478 = vst [vmem:[%s281_s19 + $0x18] sm:$0xff] %v474_v32 }
 0x141   : > { %847 = shalt.err (!%p844_p12)
}
 0x142   : > { %s848_s17 = scalar_lea.hbm %s1150_s11, 512  ;;  %s852_s14 = scalar_lea.hbm %s1211_s4, 1024 }
 0x143   : > { %p849_p8 = scmp.ne.s32.totalorder %s1150_s11, %s848_s17  ;;  %p853_p11 = scmp.lt.s32.totalorder %s1150_s11, %s1211_s4 }
 0x144   : > { %p854_p1 = scmp.lt.s32.totalorder %s852_s14, %s848_s17 }
 0x145   : > { %p850_p2 = pnand %p849_p8, %p1226_p13 }
 0x146   : > { %p855_p6 = por %p854_p1, %p853_p11 }
 0x147   : > { %p851_p5 = pneg %p850_p2 }
 0x149   : > { %p856_p9 = pnand %p855_p6, %p851_p5 }
 0x14b   : > { %859 = shalt.err (!%p856_p9)
}
 0x14c   : > { %s948_s19 = smov 256   ;;  %s949_s5 = smov 16  }
 0x14d   : > { %677 = dma.vmem_to_hbm [thread:$0]  (%p1226_p13), %s1145_s28, 512, %s1150_s11, %s1152_s8, %s948_s19, %s948_s19, %s949_s5  }
 0x14e PF: > { %s527_s29 = sand.u32 1, %s908_s20   ;;  %p1227_p0 = scmp.ne.s32.totalorder %s1221_s15, 0 }
 0x14f   : > { %p1228_p3 = scmp.ge.s32.totalorder %s940_s27, 2  ;;  %s528_s18 = scalar_lea.sflag [#allocation6], %s527_s29 }
 0x151   : > { %p686_p4 = pnand %p1228_p3, %p1227_p0 }
 0x153   : > { %p687_p7 = pneg %p686_p4 }
 0x155   : > { %903 = dma.done.wait (%p687_p7), %s528_s18, 512  }
 0x156   : > { %905 = vsyncadd (%p687_p7), %s528_s18, 4294966784  ;;  %s26_s27 = sadd.s32 1, %s940_s27   ;;  %s1229_s25 = sld [smem:[#allocation13_spill]] }
 0x157   : > { %p23_p10 = scmp.ge.s32.totalorder %s26_s27, 4   ;;  %s1230_s26 = sld [smem:[#allocation14_spill]] }
 0x158   : > { %s1231_s20 = smov %s912_s0  ;;  %s1232_s0 = smov %s916_s21 }
 0x159   : > { %s1233_s21 = smov %s1047_s12  ;;  %s1234_s22 = smov %s924_s23 }
 0x15a   : > { %s1235_s23 = smov %s928_s24  ;;  %s1236_s24 = smov %s1062_s16 }
 0x15b   :  { %25 = sbr.rel (!%p23_p10) target bundleno = 23 (0x17), region = 91 }
 0x160   :  { %533 = vsyncpa [#allocation5], 1 }
 0x161   :  { %535 = vsyncpa [#allocation5 + $0x1], 1 }
 0x162   :  { %536 = vsyncpa [#allocation6], 1 }
 0x163   :  { %538 = vsyncpa [#allocation6 + $0x1], 1 }

</bundles_post_ra>
